<compile_context>
chip_gen: v5e
topology: v5e:2x2
jax: 0.10.0
libtpu: 0.0.40
codegen_flags: <defaults>
</compile_context>

<pallas_src>
import jax
import jax.numpy as jnp
import numpy as np
from jax.experimental import pallas as pl
from jax.experimental.pallas import tpu as pltpu

# Synthetic "screen_setup": x_boxes * y_boxes
X_BOXES = 8
Y_BOXES = 8
INPUT_SIZE = X_BOXES * Y_BOXES   # 64  (fc1 fan-in, kept un-padded)
HIDDEN = 128
N_ACTIONS = 5                    # logical fc3 fan-out
OUT_PAD = 8                      # fc3 fan-out padded 5 -> 8 (full sublane group)
BLOCK_B = 1024                   # max batch rows per grid step


def _round_up(a, m):
    return ((a + m - 1) // m) * m


def dqn_kernel(x_ref, w1_ref, b1_ref, w2_ref, b2_ref, w3_ref, b3_ref, o_ref):
    # Cast activations to bf16 in-kernel (avoids a separate wrapper-side pass).
    xb = x_ref[...].astype(jnp.bfloat16)
    # fc1 + ReLU  (bf16 MXU inputs, f32 accumulate, f32 epilogue)
    h1 = jnp.dot(xb, w1_ref[...], preferred_element_type=jnp.float32)
    h1 = jnp.maximum(h1 + b1_ref[...], 0.0)
    # fc2 + ReLU
    h2 = jnp.dot(h1.astype(jnp.bfloat16), w2_ref[...],
                 preferred_element_type=jnp.float32)
    h2 = jnp.maximum(h2 + b2_ref[...], 0.0)
    # fc3 (no activation); narrow (block_b, 8) f32 store -> tiny HBM writeback
    out = jnp.dot(h2.astype(jnp.bfloat16), w3_ref[...],
                  preferred_element_type=jnp.float32)
    o_ref[...] = (out + b3_ref[...]).astype(o_ref.dtype)


def prepare_params(params):
    """Pad fc3 outputs 5 -> 8 and cast weights (not biases) to bf16."""
    w1, b1, w2, b2, w3, b3 = params
    w3p = jnp.zeros((HIDDEN, OUT_PAD), jnp.float32).at[:, :N_ACTIONS].set(w3)
    b3p = jnp.zeros((1, OUT_PAD), jnp.float32).at[:, :N_ACTIONS].set(b3)
    return (w1.astype(jnp.bfloat16), b1,
            w2.astype(jnp.bfloat16), b2,
            w3p.astype(jnp.bfloat16), b3p)


def dqn_forward(x, padded_params, *, block_b=None):
    """x: (B, INPUT_SIZE) f32 (or bf16)  ->  (B, N_ACTIONS) f32."""
    w1, b1, w2, b2, w3, b3 = padded_params
    B, F = x.shape
    assert F == INPUT_SIZE

    if block_b is None:
        # Large tiles amortize per-step overhead; keep >= 2 grid blocks when the
        # batch allows it so both v7x TensorCores get work.
        block_b = min(BLOCK_B, max(128, _round_up(pl.cdiv(B, 2), 128)))
    nb = pl.cdiv(B, block_b)
    b_pad = nb * block_b

    # Pad only the tail rows (no-op when B is a multiple of block_b).
    x_in = x if b_pad == B else jnp.pad(x, ((0, b_pad - B), (0, 0)))

    out = pl.pallas_call(
        dqn_kernel,
        out_shape=jax.ShapeDtypeStruct((b_pad, OUT_PAD), jnp.float32),
        grid_spec=pl.GridSpec(
            grid=(nb,),
            in_specs=[
                # activations: tiled over the batch grid axis (last dim = full 64)
                pl.BlockSpec((block_b, INPUT_SIZE), lambda i: (i, 0)),
                # weights / biases: VMEM-resident across all grid steps
                pl.BlockSpec((INPUT_SIZE, HIDDEN), lambda i: (0, 0)),
                pl.BlockSpec((1, HIDDEN), lambda i: (0, 0)),
                pl.BlockSpec((HIDDEN, HIDDEN), lambda i: (0, 0)),
                pl.BlockSpec((1, HIDDEN), lambda i: (0, 0)),
                pl.BlockSpec((HIDDEN, OUT_PAD), lambda i: (0, 0)),
                pl.BlockSpec((1, OUT_PAD), lambda i: (0, 0)),
            ],
            out_specs=pl.BlockSpec((block_b, OUT_PAD), lambda i: (i, 0)),
        ),
        compiler_params=pltpu.CompilerParams(
            dimension_semantics=("parallel",),   # shard batch blocks across TCs
            vmem_limit_bytes=32 * 1024 * 1024,   # safe on v7x's 64 MiB/TC VMEM
        ),
    )(x_in, w1, b1, w2, b2, w3, b3)

    # Strip batch padding and the 3 padded action columns.
    return out[:B, :N_ACTIONS]


def init_params(key):
    """Deterministic init mimicking PyTorch nn.Linear default (uniform +/- 1/sqrt(fan_in))."""
    keys = jax.random.split(key, 6)

    def linear(kw, kb, fan_in, fan_out):
        bound = 1.0 / np.sqrt(fan_in)
        w = jax.random.uniform(kw, (fan_in, fan_out), jnp.float32, -bound, bound)
        b = jax.random.uniform(kb, (1, fan_out), jnp.float32, -bound, bound)
        return w, b

    w1, b1 = linear(keys[0], keys[1], INPUT_SIZE, HIDDEN)
    w2, b2 = linear(keys[2], keys[3], HIDDEN, HIDDEN)
    w3, b3 = linear(keys[4], keys[5], HIDDEN, N_ACTIONS)
    return (w1, b1, w2, b2, w3, b3)


def _ref_bf16(x, params):
    """Reference with the same math as the kernel (bf16 matmuls, f32 accumulate)."""
    w1, b1, w2, b2, w3, b3 = params
    bf = jnp.bfloat16
    h = jnp.maximum(jnp.dot(x.astype(bf), w1.astype(bf),
                            preferred_element_type=jnp.float32) + b1, 0.0)
    h = jnp.maximum(jnp.dot(h.astype(bf), w2.astype(bf),
                            preferred_element_type=jnp.float32) + b2, 0.0)
    return jnp.dot(h.astype(bf), w3.astype(bf),
                   preferred_element_type=jnp.float32) + b3


def _ref_f32(x, params):
    w1, b1, w2, b2, w3, b3 = params
    h = jnp.maximum(x @ w1 + b1, 0.0)
    h = jnp.maximum(h @ w2 + b2, 0.0)
    return h @ w3 + b3


if __name__ == "__main__":
    key = jax.random.PRNGKey(0)
    k_param, k_x = jax.random.split(key)
    params = init_params(k_param)
    padded_params = prepare_params(params)

    # Small demo batch (single grid block).
    batch = 2
    x = jax.random.normal(k_x, (batch, INPUT_SIZE), jnp.float32)
    out = jax.block_until_ready(dqn_forward(x, padded_params))
    assert out.shape == (batch, N_ACTIONS)

    np.testing.assert_allclose(np.asarray(out), np.asarray(_ref_bf16(x, params)),
                               rtol=1e-4, atol=1e-4)
    np.testing.assert_allclose(np.asarray(out), np.asarray(_ref_f32(x, params)),
                               rtol=3e-2, atol=3e-2)

    # Second check: multi-block grid + ragged tail (exercises batch tiling / padding).
    batch2 = 300
    x2 = jax.random.normal(jax.random.PRNGKey(7), (batch2, INPUT_SIZE), jnp.float32)
    out2 = jax.block_until_ready(dqn_forward(x2, padded_params))
    assert out2.shape == (batch2, N_ACTIONS)
    np.testing.assert_allclose(np.asarray(out2), np.asarray(_ref_bf16(x2, params)),
                               rtol=1e-4, atol=1e-4)

    print("KERNEL_OK")
</pallas_src>

<mosaic_0001>
module attributes {stable_mosaic.version = 11 : i64} {
  func.func @dqn_kernel(%arg0: i32, %arg1: memref<128x64xf32, #tpu.memory_space<vmem>>, %arg2: memref<64x128xbf16, #tpu.memory_space<vmem>>, %arg3: memref<1x128xf32, #tpu.memory_space<vmem>>, %arg4: memref<128x128xbf16, #tpu.memory_space<vmem>>, %arg5: memref<1x128xf32, #tpu.memory_space<vmem>>, %arg6: memref<128x8xbf16, #tpu.memory_space<vmem>>, %arg7: memref<1x8xf32, #tpu.memory_space<vmem>>, %arg8: memref<128x8xf32, #tpu.memory_space<vmem>>) attributes {dimension_semantics = [#tpu.dimension_semantics<parallel>], iteration_bounds = array<i64: 1>, scalar_prefetch = 0 : i64, scratch_operands = 0 : i64, tpu.core_type = #tpu.core_type<tc>, window_params = [{transform_indices = @transform_0, window_bounds = array<i64: 128, 64>}, {pipeline_mode = #tpu.pipeline_mode<synchronous>, transform_indices = @transform_1, window_bounds = array<i64: 64, 128>}, {pipeline_mode = #tpu.pipeline_mode<synchronous>, transform_indices = @transform_2, window_bounds = array<i64: 1, 128>}, {pipeline_mode = #tpu.pipeline_mode<synchronous>, transform_indices = @transform_3, window_bounds = array<i64: 128, 128>}, {pipeline_mode = #tpu.pipeline_mode<synchronous>, transform_indices = @transform_4, window_bounds = array<i64: 1, 128>}, {pipeline_mode = #tpu.pipeline_mode<synchronous>, transform_indices = @transform_5, window_bounds = array<i64: 128, 8>}, {pipeline_mode = #tpu.pipeline_mode<synchronous>, transform_indices = @transform_6, window_bounds = array<i64: 1, 8>}, {transform_indices = @transform_7, window_bounds = array<i64: 128, 8>}]} {
    %c0 = arith.constant 0 : index
    %c0_0 = arith.constant 0 : index
    %0 = vector.load %arg1[%c0, %c0_0] : memref<128x64xf32, #tpu.memory_space<vmem>>, vector<128x64xf32>
    %1 = arith.truncf %0 : vector<128x64xf32> to vector<128x64xbf16>
    %c0_1 = arith.constant 0 : index
    %c0_2 = arith.constant 0 : index
    %2 = vector.load %arg2[%c0_1, %c0_2] : memref<64x128xbf16, #tpu.memory_space<vmem>>, vector<64x128xbf16>
    %cst = arith.constant dense<0.000000e+00> : vector<128x128xf32>
    %3 = tpu.matmul %1, %2, %cst {dimension_numbers = #tpu.dot_dimension_numbers<[1], [0], [0], [1], [0, 0, 1, 1], [], []>} : vector<128x64xbf16>, vector<64x128xbf16>, vector<128x128xf32> -> vector<128x128xf32>
    %c0_3 = arith.constant 0 : index
    %c0_4 = arith.constant 0 : index
    %4 = vector.load %arg3[%c0_3, %c0_4] : memref<1x128xf32, #tpu.memory_space<vmem>>, vector<1x128xf32>
    %5 = vector.broadcast %4 : vector<1x128xf32> to vector<128x128xf32>
    %6 = arith.addf %3, %5 : vector<128x128xf32>
    %cst_5 = arith.constant 0.000000e+00 : f32
    %7 = vector.broadcast %cst_5 : f32 to vector<128x128xf32>
    %8 = arith.maximumf %6, %7 : vector<128x128xf32>
    %9 = arith.truncf %8 : vector<128x128xf32> to vector<128x128xbf16>
    %c0_6 = arith.constant 0 : index
    %c0_7 = arith.constant 0 : index
    %10 = vector.load %arg4[%c0_6, %c0_7] : memref<128x128xbf16, #tpu.memory_space<vmem>>, vector<128x128xbf16>
    %cst_8 = arith.constant dense<0.000000e+00> : vector<128x128xf32>
    %11 = tpu.matmul %9, %10, %cst_8 {dimension_numbers = #tpu.dot_dimension_numbers<[1], [0], [0], [1], [0, 0, 1, 1], [], []>} : vector<128x128xbf16>, vector<128x128xbf16>, vector<128x128xf32> -> vector<128x128xf32>
    %c0_9 = arith.constant 0 : index
    %c0_10 = arith.constant 0 : index
    %12 = vector.load %arg5[%c0_9, %c0_10] : memref<1x128xf32, #tpu.memory_space<vmem>>, vector<1x128xf32>
    %13 = vector.broadcast %12 : vector<1x128xf32> to vector<128x128xf32>
    %14 = arith.addf %11, %13 : vector<128x128xf32>
    %cst_11 = arith.constant 0.000000e+00 : f32
    %15 = vector.broadcast %cst_11 : f32 to vector<128x128xf32>
    %16 = arith.maximumf %14, %15 : vector<128x128xf32>
    %17 = arith.truncf %16 : vector<128x128xf32> to vector<128x128xbf16>
    %c0_12 = arith.constant 0 : index
    %c0_13 = arith.constant 0 : index
    %18 = vector.load %arg6[%c0_12, %c0_13] : memref<128x8xbf16, #tpu.memory_space<vmem>>, vector<128x8xbf16>
    %cst_14 = arith.constant dense<0.000000e+00> : vector<128x8xf32>
    %19 = tpu.matmul %17, %18, %cst_14 {dimension_numbers = #tpu.dot_dimension_numbers<[1], [0], [0], [1], [0, 0, 1, 1], [], []>} : vector<128x128xbf16>, vector<128x8xbf16>, vector<128x8xf32> -> vector<128x8xf32>
    %c0_15 = arith.constant 0 : index
    %c0_16 = arith.constant 0 : index
    %20 = vector.load %arg7[%c0_15, %c0_16] : memref<1x8xf32, #tpu.memory_space<vmem>>, vector<1x8xf32>
    %21 = vector.broadcast %20 : vector<1x8xf32> to vector<128x8xf32>
    %22 = arith.addf %19, %21 : vector<128x8xf32>
    %c0_17 = arith.constant 0 : index
    %c0_18 = arith.constant 0 : index
    %23 = vector.load %arg8[%c0_17, %c0_18] : memref<128x8xf32, #tpu.memory_space<vmem>>, vector<128x8xf32>
    tpu.vector_store %arg8[%c0_17, %c0_18], %22 {strides = array<i32>} : memref<128x8xf32, #tpu.memory_space<vmem>>, vector<128x8xf32>,
    return
  }
  func.func @transform_0(%arg0: i32) -> (i32, i32) {
    %c0_i32 = arith.constant 0 : i32
    %c0_i32_0 = arith.constant 0 : i32
    return %arg0, %c0_i32 : i32, i32
  }
  func.func @transform_1(%arg0: i32) -> (i32, i32) {
    %c0_i32 = arith.constant 0 : i32
    %c0_i32_0 = arith.constant 0 : i32
    %c0_i32_1 = arith.constant 0 : i32
    return %c0_i32, %c0_i32_0 : i32, i32
  }
  func.func @transform_2(%arg0: i32) -> (i32, i32) {
    %c0_i32 = arith.constant 0 : i32
    %c0_i32_0 = arith.constant 0 : i32
    %c0_i32_1 = arith.constant 0 : i32
    return %c0_i32, %c0_i32_0 : i32, i32
  }
  func.func @transform_3(%arg0: i32) -> (i32, i32) {
    %c0_i32 = arith.constant 0 : i32
    %c0_i32_0 = arith.constant 0 : i32
    %c0_i32_1 = arith.constant 0 : i32
    return %c0_i32, %c0_i32_0 : i32, i32
  }
  func.func @transform_4(%arg0: i32) -> (i32, i32) {
    %c0_i32 = arith.constant 0 : i32
    %c0_i32_0 = arith.constant 0 : i32
    %c0_i32_1 = arith.constant 0 : i32
    return %c0_i32, %c0_i32_0 : i32, i32
  }
  func.func @transform_5(%arg0: i32) -> (i32, i32) {
    %c0_i32 = arith.constant 0 : i32
    %c0_i32_0 = arith.constant 0 : i32
    %c0_i32_1 = arith.constant 0 : i32
    return %c0_i32, %c0_i32_0 : i32, i32
  }
  func.func @transform_6(%arg0: i32) -> (i32, i32) {
    %c0_i32 = arith.constant 0 : i32
    %c0_i32_0 = arith.constant 0 : i32
    %c0_i32_1 = arith.constant 0 : i32
    return %c0_i32, %c0_i32_0 : i32, i32
  }
  func.func @transform_7(%arg0: i32) -> (i32, i32) {
    %c0_i32 = arith.constant 0 : i32
    %c0_i32_0 = arith.constant 0 : i32
    return %arg0, %c0_i32 : i32, i32
  }
}

</mosaic_0001>

<bundles_post_ra>
// kernel: tpu_custom_call.1
= control target key start
LH: loop header
LB: loop body
LE: loop exit
PB: predicated region body
PF: predicated region fallthrough
CT: control target
= control target key end

     0   :  { %vm87_vm0 = vcmask 523264   ;;  %vm443_vm1 = vcmask 64512   ;;  %s838_s1 = inlined_call_operand.vmem [shape: bf16[64,128], index: 1, kind: input, shape index: {}]   ;;  %s839_s2 = inlined_call_operand.vmem [shape: f32[1,128], index: 2, kind: input, shape index: {}]   ;;  %s840_s0 = inlined_call_operand.vmem [shape: f32[128,64], index: 0, kind: input, shape index: {}]   ;;  %s841_s3 = inlined_call_operand.vmem [shape: bf16[128,128], index: 3, kind: input, shape index: {}]   ;;  %s842_s4 = inlined_call_operand.vmem [shape: f32[1,128], index: 4, kind: input, shape index: {}]   ;;  %s843_s5 = inlined_call_operand.vmem [shape: bf16[128,8], index: 5, kind: input, shape index: {}]   ;;  %s844_s6 = inlined_call_operand.vmem [shape: f32[1,8], index: 6, kind: input, shape index: {}]   ;;  %s845_s7 = inlined_call_operand.vmem [shape: f32[128,8], index: 7, kind: output, shape index: {}]  }
   0x1   :  { %v555_v0 = vld [vmem:[%s838_s1 + $0x18] sm:$0xff]  ;;  %v554_v1 = vld [vmem:[%s838_s1 + $0x10] sm:$0xff]  ;;  %v553_v2 = vld [vmem:[%s838_s1 + $0x8] sm:$0xff] }
   0x2   :  { %116 = vmatpush.bf16.msra.mxu0 %v555_v0  ;;  %v552_v3 = vld [vmem:[%s838_s1] sm:$0xff]  ;;  %v28_v5 = vld [vmem:[%s840_s0 + $0x8] sm:$0xff]  ;;  %v29_v7 = vld [vmem:[%s840_s0 + $0x10] sm:$0xff] }
   0x3   :  { %v27_v4 = vld [vmem:[%s840_s0] sm:$0xff]  ;;  %v30_v8 = vld [vmem:[%s840_s0 + $0x18] sm:$0xff]  ;;  %v32_v11 = vld [vmem:[%s840_s0 + $0x28] sm:$0xff] }
   0x4   :  { %v43_v6 = vpack.c.bf16 %v28_v5, %v27_v4  ;;  %v44_v9 = vpack.c.bf16 %v30_v8, %v29_v7  ;;  %v31_v10 = vld [vmem:[%s840_s0 + $0x20] sm:$0xff]  ;;  %v33_v13 = vld [vmem:[%s840_s0 + $0x30] sm:$0xff]  ;;  %v34_v14 = vld [vmem:[%s840_s0 + $0x38] sm:$0xff] }
   0x5   :  { %v45_v12 = vpack.c.bf16 %v32_v11, %v31_v10  ;;  %v46_v15 = vpack.c.bf16 %v34_v14, %v33_v13  ;;  %v35_v16 = vld [vmem:[%s840_s0 + $0x40] sm:$0xff]  ;;  %v36_v17 = vld [vmem:[%s840_s0 + $0x48] sm:$0xff]  ;;  %v563_v19 = vld [vmem:[%s841_s3 + $0x38] sm:$0xff] }
   0x6   :  { %117 = vmatpush.bf16.msra.mxu0 %v554_v1  ;;  %v47_v18 = vpack.c.bf16 %v36_v17, %v35_v16  ;;  %253 = vmatpush.bf16.msra.mxu1 %v563_v19  ;;  %v37_v20 = vld [vmem:[%s840_s0 + $0x50] sm:$0xff]  ;;  %v38_v21 = vld [vmem:[%s840_s0 + $0x58] sm:$0xff]  ;;  %v561_v24 = vld [vmem:[%s841_s3 + $0x28] sm:$0xff] }
   0x7   :  { %572 = vmatpush.bf16.msra.mxu3 %v563_v19  ;;  %v48_v22 = vpack.c.bf16 %v38_v21, %v37_v20  ;;  %v562_v23 = vld [vmem:[%s841_s3 + $0x30] sm:$0xff]  ;;  %v560_v25 = vld [vmem:[%s841_s3 + $0x20] sm:$0xff]  ;;  %v40_v27 = vld [vmem:[%s840_s0 + $0x68] sm:$0xff] }
   0x8   :  { %v39_v26 = vld [vmem:[%s840_s0 + $0x60] sm:$0xff]  ;;  %v559_v28 = vld [vmem:[%s841_s3 + $0x18] sm:$0xff]  ;;  %v558_v30 = vld [vmem:[%s841_s3 + $0x10] sm:$0xff] }
   0x9   :  { %v49_v29 = vpack.c.bf16 %v40_v27, %v39_v26  ;;  %v557_v31 = vld [vmem:[%s841_s3 + $0x8] sm:$0xff]  ;;  %v556_v32 = vld [vmem:[%s841_s3] sm:$0xff]  ;;  %v41_v33 = vld [vmem:[%s840_s0 + $0x70] sm:$0xff] }
   0xa   :  { %118 = vmatpush.bf16.msra.mxu0 %v553_v2  ;;  %254 = vmatpush.bf16.msra.mxu1 %v562_v23  ;;  %v42_v34 = vld [vmem:[%s840_s0 + $0x78] sm:$0xff]  ;;  %v726_v37 = vld [vmem:[%s839_s2] ss:$0 sm:$0xff]  ;;  %v570_v16 = vld [vmem:[%s843_s5 + $0x30] sm:$0xff] }
   0xb   :  { %573 = vmatpush.bf16.msra.mxu3 %v562_v23  ;;  %v50_v35 = vpack.c.bf16 %v42_v34, %v41_v33  ;;  %v568_v19 = vld [vmem:[%s843_s5 + $0x20] sm:$0xff]  ;;  %v567_v23 = vld [vmem:[%s843_s5 + $0x18] sm:$0xff]  ;;  %v566_v27 = vld [vmem:[%s843_s5 + $0x10] sm:$0xff] }
   0xe   :  { %119 = vmatpush.bf16.msra.mxu0 %v552_v3  ;;  %255 = vmatpush.bf16.msra.mxu1 %v561_v24 }
   0xf   :  { %574 = vmatpush.bf16.msra.mxu3 %v561_v24 }
  0x11   :  { %480 = vmatmul.msk.bf16.vlgmr.msra.gmra.mxu0 %vm87_vm0, %v43_v6 }
  0x12   :  { %256 = vmatpush.bf16.msra.mxu1 %v560_v25 }
  0x13   :  { %575 = vmatpush.bf16.msra.mxu3 %v560_v25 }
  0x16   :  { %257 = vmatpush.bf16.msra.mxu1 %v559_v28 }
  0x17   :  { %576 = vmatpush.bf16.msra.mxu3 %v559_v28 }
  0x1a   :  { %258 = vmatpush.bf16.msra.mxu1 %v558_v30 }
  0x1b   :  { %577 = vmatpush.bf16.msra.mxu3 %v558_v30  ;;  %v564_v30 = vld [vmem:[%s843_s5] sm:$0xff] }
  0x1e   :  { %259 = vmatpush.bf16.msra.mxu1 %v557_v31 }
  0x1f   :  { %578 = vmatpush.bf16.msra.mxu3 %v557_v31 }
  0x21   :  { %481 = vmatmul.msk.bf16.gmra.mxu0 %vm87_vm0, %v44_v9 }
  0x22   :  { %260 = vmatpush.bf16.msra.mxu1 %v556_v32 }
  0x23   :  { %579 = vmatpush.bf16.msra.mxu3 %v556_v32 }
  0x31   :  { %482 = vmatmul.msk.bf16.gmra.mxu0 %vm87_vm0, %v45_v12  ;;  %v571_v12 = vld [vmem:[%s843_s5 + $0x38] sm:$0xff] }
  0x32   :  { %394 = vmatpush.bf16.msra.mxu2 %v571_v12  ;;  %580 = vmatpush.bf16.msrb.mxu3 %v571_v12 }
  0x36   :  { %395 = vmatpush.bf16.msra.mxu2 %v570_v16  ;;  %581 = vmatpush.bf16.msrb.mxu3 %v570_v16 }
  0x41   :  { %483 = vmatmul.msk.bf16.gmra.mxu0 %vm87_vm0, %v46_v15 }
  0x51   :  { %484 = vmatmul.msk.bf16.gmra.mxu0 %vm87_vm0, %v47_v18  ;;  %v569_v18 = vld [vmem:[%s843_s5 + $0x28] sm:$0xff] }
  0x52   :  { %396 = vmatpush.bf16.msra.mxu2 %v569_v18  ;;  %582 = vmatpush.bf16.msrb.mxu3 %v569_v18 }
  0x56   :  { %397 = vmatpush.bf16.msra.mxu2 %v568_v19  ;;  %583 = vmatpush.bf16.msrb.mxu3 %v568_v19 }
  0x5a   :  { %398 = vmatpush.bf16.msra.mxu2 %v567_v23  ;;  %584 = vmatpush.bf16.msrb.mxu3 %v567_v23 }
  0x5e   :  { %399 = vmatpush.bf16.msra.mxu2 %v566_v27  ;;  %585 = vmatpush.bf16.msrb.mxu3 %v566_v27 }
  0x61   :  { %485 = vmatmul.msk.bf16.gmra.mxu0 %vm87_vm0, %v48_v22 }
  0x71   :  { %486 = vmatmul.msk.bf16.gmra.mxu0 %vm87_vm0, %v49_v29  ;;  %v565_v29 = vld [vmem:[%s843_s5 + $0x8] sm:$0xff] }
  0x72   :  { %400 = vmatpush.bf16.msra.mxu2 %v565_v29  ;;  %586 = vmatpush.bf16.msrb.mxu3 %v565_v29 }
  0x76   :  { %401 = vmatpush.bf16.msra.mxu2 %v564_v30  ;;  %587 = vmatpush.bf16.msrb.mxu3 %v564_v30  ;;  %v590_v30 = vld [vmem:[%s844_s6] ss:$0 sm:$0xff] }
  0x81   :  { %487 = vmatmul.msk.bf16.gmra.mxu0 %vm87_vm0, %v50_v35 }
  0x8e   :  { %v121_v36 = vpop.f32.mrf.mxu0 }
  0x8f   :  { %v122_v38 = vadd.f32 %v726_v37, %v121_v36 }
  0x91   :  { %v161_v41 = vmax.f32 %v122_v38, 0.0 }
  0x96   :  { %v123_v39 = vpop.f32.mrf.mxu0 }
  0x97   :  { %v124_v40 = vadd.f32 %v726_v37, %v123_v39  ;;  %v589_v39 = vld [vmem:[%s842_s4] ss:$0 sm:$0xff] }
  0x99   :  { %v162_v42 = vmax.f32 %v124_v40, 0.0 }
  0x9b   :  { %v177_v43 = vpack.c.bf16 %v162_v42, %v161_v41 }
  0x9d   :  { %261 = vmatmul.bf16.vlgmr.msra.gmra.mxu1 %v177_v43 }
  0x9e   :  { %v126_v44 = vpop.f32.mrf.mxu0 }
  0x9f   :  { %v127_v45 = vadd.f32 %v726_v37, %v126_v44 }
  0xa1   :  { %v163_v48 = vmax.f32 %v127_v45, 0.0 }
  0xa6   :  { %v128_v46 = vpop.f32.mrf.mxu0 }
  0xa7   :  { %v129_v47 = vadd.f32 %v726_v37, %v128_v46 }
  0xa9   :  { %v164_v49 = vmax.f32 %v129_v47, 0.0 }
  0xab   :  { %v178_v50 = vpack.c.bf16 %v164_v49, %v163_v48 }
  0xad   :  { %266 = vmatmul.bf16.gmra.mxu1 %v178_v50 }
  0xae   :  { %v131_v51 = vpop.f32.mrf.mxu0 }
  0xaf   :  { %v132_v52 = vadd.f32 %v726_v37, %v131_v51 }
  0xb1   :  { %v165_v55 = vmax.f32 %v132_v52, 0.0 }
  0xb6   :  { %v133_v53 = vpop.f32.mrf.mxu0 }
  0xb7   :  { %v134_v54 = vadd.f32 %v726_v37, %v133_v53 }
  0xb9   :  { %v166_v56 = vmax.f32 %v134_v54, 0.0 }
  0xbb   :  { %v179_v57 = vpack.c.bf16 %v166_v56, %v165_v55 }
  0xbd   :  { %271 = vmatmul.bf16.gmra.mxu1 %v179_v57 }
  0xbe   :  { %v136_v58 = vpop.f32.mrf.mxu0 }
  0xbf   :  { %v137_v59 = vadd.f32 %v726_v37, %v136_v58 }
  0xc1   :  { %v167_v62 = vmax.f32 %v137_v59, 0.0 }
  0xc6   :  { %v138_v60 = vpop.f32.mrf.mxu0 }
  0xc7   :  { %v139_v61 = vadd.f32 %v726_v37, %v138_v60 }
  0xc9   :  { %v168_v63 = vmax.f32 %v139_v61, 0.0 }
  0xcb   :  { %v180_v0 = vpack.c.bf16 %v168_v63, %v167_v62 }
  0xcd   :  { %276 = vmatmul.bf16.gmra.mxu1 %v180_v0 }
  0xce   :  { %v141_v1 = vpop.f32.mrf.mxu0 }
  0xcf   :  { %v142_v2 = vadd.f32 %v726_v37, %v141_v1 }
  0xd1   :  { %v169_v5 = vmax.f32 %v142_v2, 0.0 }
  0xd6   :  { %v143_v3 = vpop.f32.mrf.mxu0 }
  0xd7   :  { %v144_v4 = vadd.f32 %v726_v37, %v143_v3 }
  0xd9   :  { %v170_v6 = vmax.f32 %v144_v4, 0.0 }
  0xdb   :  { %v181_v7 = vpack.c.bf16 %v170_v6, %v169_v5 }
  0xdd   :  { %281 = vmatmul.bf16.gmra.mxu1 %v181_v7 }
  0xde   :  { %v146_v8 = vpop.f32.mrf.mxu0 }
  0xdf   :  { %v147_v9 = vadd.f32 %v726_v37, %v146_v8 }
  0xe1   :  { %v171_v13 = vmax.f32 %v147_v9, 0.0 }
  0xe6   :  { %v148_v10 = vpop.f32.mrf.mxu0 }
  0xe7   :  { %v149_v11 = vadd.f32 %v726_v37, %v148_v10 }
  0xe9   :  { %v172_v14 = vmax.f32 %v149_v11, 0.0 }
  0xeb   :  { %v182_v15 = vpack.c.bf16 %v172_v14, %v171_v13 }
  0xed   :  { %286 = vmatmul.bf16.gmra.mxu1 %v182_v15 }
  0xee   :  { %v151_v17 = vpop.f32.mrf.mxu0 }
  0xef   :  { %v152_v20 = vadd.f32 %v726_v37, %v151_v17 }
  0xf1   :  { %v173_v24 = vmax.f32 %v152_v20, 0.0 }
  0xf6   :  { %v153_v21 = vpop.f32.mrf.mxu0 }
  0xf7   :  { %v154_v22 = vadd.f32 %v726_v37, %v153_v21 }
  0xf9   :  { %v174_v25 = vmax.f32 %v154_v22, 0.0 }
  0xfb   :  { %v183_v26 = vpack.c.bf16 %v174_v25, %v173_v24 }
  0xfd   :  { %291 = vmatmul.bf16.vlgmr.msra.gmra.mxu3 %v183_v26 }
  0xfe   :  { %v156_v28 = vpop.f32.mrf.mxu0 }
  0xff   :  { %v157_v31 = vadd.f32 %v726_v37, %v156_v28 }
 0x101   :  { %v175_v34 = vmax.f32 %v157_v31, 0.0 }
 0x106   :  { %v158_v32 = vpop.f32.mrf.mxu0 }
 0x107   :  { %v159_v33 = vadd.f32 %v726_v37, %v158_v32 }
 0x109   :  { %v176_v35 = vmax.f32 %v159_v33, 0.0 }
 0x10b   :  { %v184_v36 = vpack.c.bf16 %v176_v35, %v175_v34 }
 0x10d   :  { %296 = vmatmul.bf16.gmra.mxu3 %v184_v36 }
 0x11a   :  { %v262_v38 = vpop.f32.mrf.mxu1 }
 0x11b   :  { %v263_v40 = vadd.f32 %v589_v39, %v262_v38 }
 0x11d   :  { %v302_v43 = vmax.f32 %v263_v40, 0.0 }
 0x122   :  { %v264_v41 = vpop.f32.mrf.mxu1 }
 0x123   :  { %v265_v42 = vadd.f32 %v589_v39, %v264_v41 }
 0x125   :  { %v303_v44 = vmax.f32 %v265_v42, 0.0 }
 0x127   :  { %v318_v45 = vpack.c.bf16 %v303_v44, %v302_v43 }
 0x129   :  { %402 = vmatmul.bf16.vlgmr.msra.gmra.mxu2 %v318_v45 }
 0x12a   :  { %v267_v46 = vpop.f32.mrf.mxu1 }
 0x12b   :  { %v268_v47 = vadd.f32 %v589_v39, %v267_v46 }
 0x12d   :  { %v304_v49 = vmax.f32 %v268_v47, 0.0 }
 0x132   :  { %v269_v48 = vpop.f32.mrf.mxu1 }
 0x133   :  { %v270_v37 = vadd.f32 %v589_v39, %v269_v48 }
 0x135   :  { %v305_v50 = vmax.f32 %v270_v37, 0.0 }
 0x137   :  { %v319_v51 = vpack.c.bf16 %v305_v50, %v304_v49 }
 0x139   :  { %407 = vmatmul.bf16.gmra.mxu2 %v319_v51 }
 0x13a   :  { %v272_v52 = vpop.f32.mrf.mxu1 }
 0x13b   :  { %v273_v53 = vadd.f32 %v589_v39, %v272_v52 }
 0x13d   :  { %v306_v56 = vmax.f32 %v273_v53, 0.0 }
 0x142   :  { %v274_v54 = vpop.f32.mrf.mxu1 }
 0x143   :  { %v275_v55 = vadd.f32 %v589_v39, %v274_v54 }
 0x145   :  { %v307_v57 = vmax.f32 %v275_v55, 0.0 }
 0x147   :  { %v320_v58 = vpack.c.bf16 %v307_v57, %v306_v56 }
 0x149   :  { %412 = vmatmul.bf16.gmra.mxu2 %v320_v58 }
 0x14a   :  { %v277_v59 = vpop.f32.mrf.mxu1 }
 0x14b   :  { %v278_v60 = vadd.f32 %v589_v39, %v277_v59 }
 0x14d   :  { %v308_v63 = vmax.f32 %v278_v60, 0.0 }
 0x152   :  { %v279_v61 = vpop.f32.mrf.mxu1 }
 0x153   :  { %v280_v62 = vadd.f32 %v589_v39, %v279_v61 }
 0x155   :  { %v309_v0 = vmax.f32 %v280_v62, 0.0 }
 0x157   :  { %v321_v1 = vpack.c.bf16 %v309_v0, %v308_v63 }
 0x159   :  { %417 = vmatmul.bf16.gmra.mxu2 %v321_v1 }
 0x15a   :  { %v282_v2 = vpop.f32.mrf.mxu1 }
 0x15b   :  { %v283_v3 = vadd.f32 %v589_v39, %v282_v2 }
 0x15d   :  { %v310_v6 = vmax.f32 %v283_v3, 0.0 }
 0x162   :  { %v284_v4 = vpop.f32.mrf.mxu1 }
 0x163   :  { %v285_v5 = vadd.f32 %v589_v39, %v284_v4 }
 0x165   :  { %v311_v7 = vmax.f32 %v285_v5, 0.0 }
 0x167   :  { %v322_v8 = vpack.c.bf16 %v311_v7, %v310_v6 }
 0x169   :  { %422 = vmatmul.bf16.gmra.mxu2 %v322_v8 }
 0x16a   :  { %v287_v9 = vpop.f32.mrf.mxu1 }
 0x16b   :  { %v288_v10 = vadd.f32 %v589_v39, %v287_v9 }
 0x16d   :  { %v312_v13 = vmax.f32 %v288_v10, 0.0 }
 0x172   :  { %v289_v11 = vpop.f32.mrf.mxu1 }
 0x173   :  { %v290_v12 = vadd.f32 %v589_v39, %v289_v11 }
 0x175   :  { %v313_v14 = vmax.f32 %v290_v12, 0.0 }
 0x177   :  { %v323_v15 = vpack.c.bf16 %v313_v14, %v312_v13 }
 0x179   :  { %427 = vmatmul.bf16.gmra.mxu2 %v323_v15 }
 0x180   :  { %v292_v16 = vpop.f32.mrf.mxu3 }
 0x181   :  { %v293_v17 = vadd.f32 %v589_v39, %v292_v16 }
 0x183   :  { %v314_v20 = vmax.f32 %v293_v17, 0.0 }
 0x188   :  { %v294_v18 = vpop.f32.mrf.mxu3 }
 0x189   :  { %v295_v19 = vadd.f32 %v589_v39, %v294_v18 }
 0x18b   :  { %v315_v21 = vmax.f32 %v295_v19, 0.0 }
 0x18d   :  { %v324_v22 = vpack.c.bf16 %v315_v21, %v314_v20 }
 0x18f   :  { %432 = vmatmul.bf16.vlgmr.msrb.gmra.mxu3 %v324_v22 }
 0x190   :  { %v297_v23 = vpop.f32.mrf.mxu3 }
 0x191   :  { %v298_v24 = vadd.f32 %v589_v39, %v297_v23 }
 0x193   :  { %v316_v27 = vmax.f32 %v298_v24, 0.0 }
 0x198   :  { %v299_v25 = vpop.f32.mrf.mxu3 }
 0x199   :  { %v300_v26 = vadd.f32 %v589_v39, %v299_v25 }
 0x19b   :  { %v317_v28 = vmax.f32 %v300_v26, 0.0 }
 0x19d   :  { %v325_v29 = vpack.c.bf16 %v317_v28, %v316_v27 }
 0x19f   :  { %437 = vmatmul.bf16.gmra.mxu3 %v325_v29 }
 0x1ac   :  { %v403_v31 = vpop.f32.mrf.mxu2 }
 0x1ad   :  { %v404_v32 = vadd.f32 %v590_v30, %v403_v31 }
 0x1af   :  { %444 = vst.msk [vmem:[%s845_s7] sm:$0xff] %vm443_vm1, %v404_v32 }
 0x1b4   :  { %v405_v33 = vpop.f32.mrf.mxu2 }
 0x1b5   :  { %v406_v34 = vadd.f32 %v590_v30, %v405_v33 }
 0x1b7   :  { %445 = vst.msk [vmem:[%s845_s7 + $0x8] sm:$0xff] %vm443_vm1, %v406_v34 }
 0x1bc   :  { %v408_v35 = vpop.f32.mrf.mxu2 }
 0x1bd   :  { %v409_v36 = vadd.f32 %v590_v30, %v408_v35 }
 0x1bf   :  { %446 = vst.msk [vmem:[%s845_s7 + $0x10] sm:$0xff] %vm443_vm1, %v409_v36 }
 0x1c4   :  { %v410_v38 = vpop.f32.mrf.mxu2 }
 0x1c5   :  { %v411_v39 = vadd.f32 %v590_v30, %v410_v38 }
 0x1c7   :  { %447 = vst.msk [vmem:[%s845_s7 + $0x18] sm:$0xff] %vm443_vm1, %v411_v39 }
 0x1cc   :  { %v413_v40 = vpop.f32.mrf.mxu2 }
 0x1cd   :  { %v414_v41 = vadd.f32 %v590_v30, %v413_v40 }
 0x1cf   :  { %448 = vst.msk [vmem:[%s845_s7 + $0x20] sm:$0xff] %vm443_vm1, %v414_v41 }
 0x1d4   :  { %v415_v42 = vpop.f32.mrf.mxu2 }
 0x1d5   :  { %v416_v43 = vadd.f32 %v590_v30, %v415_v42 }
 0x1d7   :  { %449 = vst.msk [vmem:[%s845_s7 + $0x28] sm:$0xff] %vm443_vm1, %v416_v43 }
 0x1dc   :  { %v418_v44 = vpop.f32.mrf.mxu2 }
 0x1dd   :  { %v419_v45 = vadd.f32 %v590_v30, %v418_v44 }
 0x1df   :  { %450 = vst.msk [vmem:[%s845_s7 + $0x30] sm:$0xff] %vm443_vm1, %v419_v45 }
 0x1e4   :  { %v420_v46 = vpop.f32.mrf.mxu2 }
 0x1e5   :  { %v421_v47 = vadd.f32 %v590_v30, %v420_v46 }
 0x1e7   :  { %451 = vst.msk [vmem:[%s845_s7 + $0x38] sm:$0xff] %vm443_vm1, %v421_v47 }
 0x1ec   :  { %v423_v48 = vpop.f32.mrf.mxu2 }
 0x1ed   :  { %v424_v37 = vadd.f32 %v590_v30, %v423_v48 }
 0x1ef   :  { %452 = vst.msk [vmem:[%s845_s7 + $0x40] sm:$0xff] %vm443_vm1, %v424_v37 }
 0x1f4   :  { %v425_v49 = vpop.f32.mrf.mxu2 }
 0x1f5   :  { %v426_v50 = vadd.f32 %v590_v30, %v425_v49 }
 0x1f7   :  { %453 = vst.msk [vmem:[%s845_s7 + $0x48] sm:$0xff] %vm443_vm1, %v426_v50 }
 0x1fc   :  { %v428_v51 = vpop.f32.mrf.mxu2 }
 0x1fd   :  { %v429_v52 = vadd.f32 %v590_v30, %v428_v51 }
 0x1ff   :  { %454 = vst.msk [vmem:[%s845_s7 + $0x50] sm:$0xff] %vm443_vm1, %v429_v52 }
 0x204   :  { %v430_v53 = vpop.f32.mrf.mxu2 }
 0x205   :  { %v431_v54 = vadd.f32 %v590_v30, %v430_v53 }
 0x207   :  { %455 = vst.msk [vmem:[%s845_s7 + $0x58] sm:$0xff] %vm443_vm1, %v431_v54 }
 0x212   :  { %v433_v55 = vpop.f32.mrf.mxu3 }
 0x213   :  { %v434_v56 = vadd.f32 %v590_v30, %v433_v55 }
 0x215   :  { %456 = vst.msk [vmem:[%s845_s7 + $0x60] sm:$0xff] %vm443_vm1, %v434_v56 }
 0x21a   :  { %v435_v57 = vpop.f32.mrf.mxu3 }
 0x21b   :  { %v436_v58 = vadd.f32 %v590_v30, %v435_v57 }
 0x21d   :  { %457 = vst.msk [vmem:[%s845_s7 + $0x68] sm:$0xff] %vm443_vm1, %v436_v58 }
 0x222   :  { %v438_v59 = vpop.f32.mrf.mxu3 }
 0x223   :  { %v439_v60 = vadd.f32 %v590_v30, %v438_v59 }
 0x225   :  { %458 = vst.msk [vmem:[%s845_s7 + $0x70] sm:$0xff] %vm443_vm1, %v439_v60 }
 0x22a   :  { %v440_v61 = vpop.f32.mrf.mxu3 }
 0x22b   :  { %v441_v62 = vadd.f32 %v590_v30, %v440_v61 }
 0x22d   :  { %459 = vst.msk [vmem:[%s845_s7 + $0x78] sm:$0xff] %vm443_vm1, %v441_v62 }

</bundles_post_ra>
